<compile_context>
chip_gen: v6e
topology: v6e:2x2x1
jax: 0.10.0
libtpu: 0.0.40
codegen_flags: <defaults>
</compile_context>

<pallas_src>
import functools

import jax
import jax.numpy as jnp
from jax.experimental import pallas as pl
from jax.experimental.pallas import tpu as pltpu

_LANES = 128


def _mse_partial_kernel(p_ref, t_ref, o_ref, acc_ref, *, valid_rows, mask_rows):
    """Accumulates sum((p - t)^2) for one split; writes it to o_ref[0, 0] at the end."""
    c = pl.program_id(0)            # split (TensorCore) index
    j = pl.program_id(1)            # block index within the split
    inner = pl.num_programs(1)
    tile_rows = p_ref.shape[0]

    @pl.when(j == 0)
    def _():
        acc_ref[...] = jnp.zeros_like(acc_ref)

    d = p_ref[...].astype(jnp.float32) - t_ref[...].astype(jnp.float32)
    sq = d * d

    def _accumulate(vals):
        # (tile_rows,128) -> (tile_rows//8, 8, 128) view; summing axis 0 is
        # pure VPU vreg adds, so the accumulator dependency chain has no
        # per-step cross-sublane (XLU) reduce.
        acc_ref[...] += jnp.sum(vals.reshape(-1, 8, _LANES), axis=0)

    if mask_rows:
        base = (c * inner + j) * tile_rows       # un-clamped global row base
        needs_mask = base + tile_rows > valid_rows

        @pl.when(jnp.logical_not(needs_mask))
        def _():
            _accumulate(sq)                      # interior block: unmasked

        @pl.when(needs_mask)
        def _():
            # Overhanging last block or clamped duplicate block: zero out rows
            # past the valid extent (covers both cases via the global row id).
            row_ids = base + jax.lax.broadcasted_iota(
                jnp.int32, (tile_rows, _LANES), 0)
            _accumulate(jnp.where(row_ids < valid_rows, sq, 0.0))
    else:
        _accumulate(sq)

    @pl.when(j == inner - 1)
    def _():
        o_ref[0, 0] = jnp.sum(acc_ref[...])


def _tc_count():
    """TensorCores per chip: 2 on v7x, 1 on v5e/v6e (best-effort detection)."""
    try:
        kind = jax.devices()[0].device_kind.lower()
    except Exception:
        return 1
    return 2 if "v7" in kind else 1


def custom_mse_loss(predicted, target, scale_factor=1.0):
    """scale_factor * mean((predicted - target)**2), computed with a Pallas kernel."""
    assert predicted.shape == target.shape, "MSELoss expects matching shapes"
    n_elems = predicted.size
    if n_elems == 0:
        return jnp.float32(0.0)

    p = jnp.ravel(predicted)
    t = jnp.ravel(target)

    isz_p = jnp.dtype(p.dtype).itemsize
    isz_t = jnp.dtype(t.dtype).itemsize
    # Native sublane packing: 8 rows (4-byte), 16 (2-byte), 32 (1-byte).
    pack = max(8, 32 // min(isz_p, isz_t))
    chunk = pack * _LANES
    n_aligned = (n_elems // chunk) * chunk

    # Tail (< pack*128 elements): tiny plain-JAX reduction so we never jnp.pad
    # (padding would materialize full HBM copies of BOTH inputs).
    if n_aligned < n_elems:
        dtail = p[n_aligned:].astype(jnp.float32) - t[n_aligned:].astype(jnp.float32)
        tail_sum = jnp.sum(dtail * dtail)
    else:
        tail_sum = jnp.float32(0.0)

    if n_aligned == 0:
        total = tail_sum
    else:
        rows = n_aligned // _LANES              # multiple of `pack`
        # Prefix slice + reshape of a contiguous array; a no-op when the input
        # size is already chunk-aligned (the common case).
        p2 = p[:n_aligned].reshape(rows, _LANES)
        t2 = t[:n_aligned].reshape(rows, _LANES)

        num_cores = _tc_count()
        # ~2 MiB per input block on v5e/v6e, ~4 MiB on v7x (faster HBM).
        block_bytes = (4 if num_cores > 1 else 2) * 1024 * 1024
        tile_rows = min(rows, max(pack, block_bytes // (_LANES * max(isz_p, isz_t))))
        tile_rows = max(pack, (tile_rows // pack) * pack)

        blocks_total = pl.cdiv(rows, tile_rows)
        num_splits = num_cores if (num_cores > 1 and blocks_total >= num_cores) else 1
        inner = pl.cdiv(blocks_total, num_splits)
        last_block = blocks_total - 1
        # Mask needed iff a block overhangs `rows` (partial last block) or a
        # split gets a clamped duplicate block (blocks_total % num_splits != 0).
        mask_rows = (rows % tile_rows != 0) or (num_splits * inner != blocks_total)

        def in_map(c, j):
            # Clamp so DMAs never target a fully out-of-bounds block; duplicate
            # blocks contribute zero via the in-kernel row mask.
            return (jnp.minimum(c * inner + j, last_block), 0)

        kernel = functools.partial(
            _mse_partial_kernel, valid_rows=rows, mask_rows=mask_rows)

        # Double-buffered pipeline footprint (2 inputs x 2 buffers); only raise
        # the scoped-VMEM limit when the smallest default (16 MiB) would not fit.
        pipeline_bytes = 2 * tile_rows * _LANES * (isz_p + isz_t)
        extra_params = {}
        if pipeline_bytes > 12 * 1024 * 1024:
            extra_params["vmem_limit_bytes"] = pipeline_bytes + 4 * 1024 * 1024

        def launch(split_sem):
            return pl.pallas_call(
                kernel,
                out_shape=jax.ShapeDtypeStruct((num_splits, 1), jnp.float32),
                grid=(num_splits, inner),
                in_specs=[
                    pl.BlockSpec((tile_rows, _LANES), in_map),
                    pl.BlockSpec((tile_rows, _LANES), in_map),
                ],
                out_specs=pl.BlockSpec(
                    (1, 1), lambda c, j: (c, 0), memory_space=pltpu.SMEM),
                scratch_shapes=[pltpu.VMEM((8, _LANES), jnp.float32)],
                compiler_params=pltpu.CompilerParams(
                    dimension_semantics=(split_sem, pltpu.ARBITRARY),
                    **extra_params),
            )(p2, t2)

        if num_splits > 1:
            # v7x: shard the leading grid axis across the two TensorCores.
            try:
                partials = launch(pltpu.CORE_PARALLEL)
            except Exception:
                # Safety net if CORE_PARALLEL is rejected on this toolchain.
                partials = launch(pltpu.PARALLEL)
        else:
            partials = launch(pltpu.ARBITRARY)

        total = jnp.sum(partials) + tail_sum

    # Mean normalization + scale_factor (tiny wrapper epilogue).
    return total * jnp.float32(float(scale_factor) / float(n_elems))


if __name__ == "__main__":
    def check(shape, scale, key, dtype=jnp.float32, rtol=1e-4, atol=1e-6):
        k1, k2 = jax.random.split(key)
        pred = jax.random.normal(k1, shape, dtype=jnp.float32).astype(dtype)
        targ = jax.random.normal(k2, shape, dtype=jnp.float32).astype(dtype)
        loss = jax.block_until_ready(custom_mse_loss(pred, targ, scale_factor=scale))
        d = pred.astype(jnp.float32) - targ.astype(jnp.float32)
        ref = scale * jnp.mean(d * d)
        assert jnp.allclose(loss, ref, rtol=rtol, atol=atol), (shape, dtype, loss, ref)
        return loss

    key = jax.random.PRNGKey(0)

    # Module-consistent small shape: batch=2, channels=4, spatial 16x16 (aligned).
    key, sub = jax.random.split(key)
    check((2, 4, 16, 16), 2.5, sub)

    # Non-chunk-aligned size: exercises the wrapper tail path (no jnp.pad).
    key, sub = jax.random.split(key)
    check((300, 700), 1.0, sub)

    # rows > tile_rows and not a tile multiple: exercises the pl.when-gated
    # overhang mask on the last block only.
    key, sub = jax.random.split(key)
    check((4100, 130), 0.75, sub)

    # bf16 inputs: exercises dtype-aware (16,128) packing / tile rounding.
    key, sub = jax.random.split(key)
    check((33, 100), 1.5, sub, dtype=jnp.bfloat16, rtol=1e-3, atol=1e-5)

    print("KERNEL_OK")
</pallas_src>

<mosaic_0001>
module attributes {stable_mosaic.version = 11 : i64} {
  func.func @_mse_partial_kernel(%arg0: i32, %arg1: i32, %arg2: memref<16x128xf32, #tpu.memory_space<vmem>>, %arg3: memref<16x128xf32, #tpu.memory_space<vmem>>, %arg4: memref<1x1xf32, #tpu.memory_space<smem>>, %arg5: memref<8x128xf32, #tpu.memory_space<vmem>>) attributes {dimension_semantics = [#tpu.dimension_semantics<arbitrary>, #tpu.dimension_semantics<arbitrary>], iteration_bounds = array<i64: 1, 1>, scalar_prefetch = 0 : i64, scratch_operands = 1 : i64, tpu.core_type = #tpu.core_type<tc>, window_params = [{transform_indices = @transform_0, window_bounds = array<i64: 16, 128>}, {transform_indices = @transform_1, window_bounds = array<i64: 16, 128>}, {transform_indices = @transform_2, window_bounds = array<i64: 1, 1>}]} {
    %c0_i32 = arith.constant 0 : i32
    %0 = arith.cmpi eq, %arg1, %c0_i32 : i32
    %1 = arith.extui %0 : i1 to i32
    %c0_i32_0 = arith.constant 0 : i32
    %2 = arith.cmpi ne, %1, %c0_i32_0 : i32
    scf.if %2 {
      %cst_10 = arith.constant 0.000000e+00 : f32
      %15 = vector.broadcast %cst_10 : f32 to vector<8x128xf32>
      %c0_11 = arith.constant 0 : index
      %c0_12 = arith.constant 0 : index
      %16 = vector.load %arg5[%c0_11, %c0_12] : memref<8x128xf32, #tpu.memory_space<vmem>>, vector<8x128xf32>
      tpu.vector_store %arg5[%c0_11, %c0_12], %15 {strides = array<i32>} : memref<8x128xf32, #tpu.memory_space<vmem>>, vector<8x128xf32>,
    } else {
    }
    %c0 = arith.constant 0 : index
    %c0_1 = arith.constant 0 : index
    %3 = vector.load %arg2[%c0, %c0_1] : memref<16x128xf32, #tpu.memory_space<vmem>>, vector<16x128xf32>
    %c0_2 = arith.constant 0 : index
    %c0_3 = arith.constant 0 : index
    %4 = vector.load %arg3[%c0_2, %c0_3] : memref<16x128xf32, #tpu.memory_space<vmem>>, vector<16x128xf32>
    %5 = arith.subf %3, %4 : vector<16x128xf32>
    %6 = arith.mulf %5, %5 : vector<16x128xf32>
    %c0_4 = arith.constant 0 : index
    %c0_5 = arith.constant 0 : index
    %7 = vector.load %arg5[%c0_4, %c0_5] : memref<8x128xf32, #tpu.memory_space<vmem>>, vector<8x128xf32>
    %8 = vector.shape_cast %6 : vector<16x128xf32> to vector<2x8x128xf32>
    %cst = arith.constant dense<0.000000e+00> : vector<8x128xf32>
    %9 = vector.multi_reduction <add>, %8, %cst [0] : vector<2x8x128xf32> to vector<8x128xf32>
    %10 = arith.addf %7, %9 : vector<8x128xf32>
    %c0_6 = arith.constant 0 : index
    %c0_7 = arith.constant 0 : index
    %11 = vector.load %arg5[%c0_6, %c0_7] : memref<8x128xf32, #tpu.memory_space<vmem>>, vector<8x128xf32>
    tpu.vector_store %arg5[%c0_6, %c0_7], %10 {strides = array<i32>} : memref<8x128xf32, #tpu.memory_space<vmem>>, vector<8x128xf32>,
    %c0_i32_8 = arith.constant 0 : i32
    %12 = arith.cmpi eq, %arg1, %c0_i32_8 : i32
    %13 = arith.extui %12 : i1 to i32
    %c0_i32_9 = arith.constant 0 : i32
    %14 = arith.cmpi ne, %13, %c0_i32_9 : i32
    scf.if %14 {
      %c0_10 = arith.constant 0 : index
      %c0_11 = arith.constant 0 : index
      %15 = vector.load %arg5[%c0_10, %c0_11] : memref<8x128xf32, #tpu.memory_space<vmem>>, vector<8x128xf32>
      %16 = vector.shape_cast %15 : vector<8x128xf32> to vector<1x8x128xf32>
      %cst_12 = arith.constant dense<0.000000e+00> : vector<1xf32>
      %17 = vector.multi_reduction <add>, %16, %cst_12 [1, 2] : vector<1x8x128xf32> to vector<1xf32>
      %18 = vector.shape_cast %17 : vector<1xf32> to vector<1x1x1xf32>
      %19 = vector.extract %18[0, 0, 0] : f32 from vector<1x1x1xf32>
      %c0_13 = arith.constant 0 : index
      %c0_14 = arith.constant 0 : index
      %20 = memref.load %arg4[%c0_13, %c0_14] : memref<1x1xf32, #tpu.memory_space<smem>>
      memref.store %19, %arg4[%c0_13, %c0_14] : memref<1x1xf32, #tpu.memory_space<smem>>
    } else {
    }
    return
  }
  func.func @transform_0(%arg0: i32, %arg1: i32) -> (i32, i32) {
    %c1_i32 = arith.constant 1 : i32
    %0 = arith.muli %arg0, %c1_i32 : i32
    %1 = arith.addi %0, %arg1 : i32
    %c0_i32 = arith.constant 0 : i32
    %2 = arith.minsi %1, %c0_i32 : i32
    %c0_i32_0 = arith.constant 0 : i32
    %c0_i32_1 = arith.constant 0 : i32
    return %2, %c0_i32_0 : i32, i32
  }
  func.func @transform_1(%arg0: i32, %arg1: i32) -> (i32, i32) {
    %c1_i32 = arith.constant 1 : i32
    %0 = arith.muli %arg0, %c1_i32 : i32
    %1 = arith.addi %0, %arg1 : i32
    %c0_i32 = arith.constant 0 : i32
    %2 = arith.minsi %1, %c0_i32 : i32
    %c0_i32_0 = arith.constant 0 : i32
    %c0_i32_1 = arith.constant 0 : i32
    return %2, %c0_i32_0 : i32, i32
  }
  func.func @transform_2(%arg0: i32, %arg1: i32) -> (i32, i32) {
    %c0_i32 = arith.constant 0 : i32
    %c0_i32_0 = arith.constant 0 : i32
    return %arg0, %c0_i32 : i32, i32
  }
}

</mosaic_0001>

<bundles_post_ra>
// kernel: tpu_custom_call.1
= control target key start
LH: loop header
LB: loop body
LE: loop exit
PB: predicated region body
PF: predicated region fallthrough
CT: control target
= control target key end

     0   :  { %7 = vsyncpa [#allocation4], 0  ;;  %s201_s0 = inlined_call_operand.hbm [shape: f32[16,128], index: 0, kind: input, shape index: {}]   ;;  %s202_s1 = inlined_call_operand.hbm [shape: f32[16,128], index: 1, kind: input, shape index: {}]   ;;  %s203_s2 = inlined_call_operand.hbm [shape: f32[1,1], index: 2, kind: output, shape index: {}]  }
   0x1   :  { %8 = vsyncpa [#allocation7], 0 }
   0x2   :  { %9 = vsyncpa [#allocation5], 0  ;;  %s172_s9 = smov [#allocation3]  }
   0x3   :  { %s21_s10 = sshll.u32 %s172_s9, 4  ;;  %s22_s10 = int_to_ptr.vmem [resolvable:$true] %s21_s10 }
   0x4   :  { %s126_s11 = scalar_lea.vmem %s22_s10, 256  ;;  %p131_p1 = scmp.lt.s32.totalorder %s22_s10, %s22_s10 }
   0x5   :  { %p127_p0 = scmp.ne.s32.totalorder %s22_s10, %s126_s11  ;;  %p132_p2 = scmp.lt.s32.totalorder %s126_s11, %s126_s11 }
   0x7   :  { %p133_p3 = por %p132_p2, %p131_p1 }
   0x9   :  { %p134_p4 = pnand %p133_p3, %p127_p0 }
   0xb   :  { %137 = shalt.err (!%p134_p4)
}
   0xc   :  { %s173_s12 = smov 128   ;;  %s174_s13 = smov 8  }
   0xd   :  { %27 = dma.hbm_to_vmem [thread:$0]  %s201_s0, 256, %s22_s10, [#allocation4], %s173_s12, %s173_s12, %s174_s13  }
   0xe   :  { %s175_s16 = smov [#allocation6]  }
   0xf   :  { %s39_s17 = sshll.u32 %s175_s16, 4  ;;  %s40_s17 = int_to_ptr.vmem [resolvable:$true] %s39_s17 }
  0x10   :  { %s146_s18 = scalar_lea.vmem %s40_s17, 256  ;;  %p151_p6 = scmp.lt.s32.totalorder %s40_s17, %s40_s17 }
  0x11   :  { %p147_p5 = scmp.ne.s32.totalorder %s40_s17, %s146_s18  ;;  %p152_p7 = scmp.lt.s32.totalorder %s146_s18, %s146_s18 }
  0x13   :  { %p153_p8 = por %p152_p7, %p151_p6 }
  0x15   :  { %p154_p9 = pnand %p153_p8, %p147_p5 }
  0x17   :  { %157 = shalt.err (!%p154_p9)
}
  0x18   :  { %45 = dma.hbm_to_vmem [thread:$0]  %s202_s1, 256, %s40_s17, [#allocation7], %s173_s12, %s173_s12, %s174_s13  }
  0x19   :  { %166 = dma.done.wait [#allocation4], 256  }
  0x1a   :  { %167 = vsyncadd [#allocation4], 4294967040 }
  0x1b   :  { %168 = dma.done.wait [#allocation7], 256  }
  0x1c   :  { %169 = vsyncadd [#allocation7], 4294967040  ;;  %v65_v0 = vld [vmem:[#allocation3] sm:$0xff]  ;;  %v66_v1 = vld [vmem:[#allocation3 + $0x8] sm:$0xff]  ;;  %s176_s1 = smov [#allocation8]  }
  0x1d   :  { %v67_v2 = vld [vmem:[#allocation6] sm:$0xff]  ;;  %v68_v3 = vld [vmem:[#allocation6 + $0x8] sm:$0xff] }
  0x1e   :  { %v69_v4 = vsub.f32 %v65_v0, %v67_v2  ;;  %v70_v5 = vsub.f32 %v66_v1, %v68_v3 }
  0x20   :  { %v71_v6 = vmul.f32 %v69_v4, %v69_v4  ;;  %v72_v7 = vmul.f32 %v70_v5, %v70_v5 }
  0x22   :  { %v74_v8 = vadd.f32 %v72_v7, %v71_v6 }
  0x24   :  { %81 = vadd.xlane.f32.xlu0 %v74_v8 }
  0xad   :  { %v82_v9 = vpop.xlane.xlu0 %81 }
  0xae   :  { %v83_v10 = vrot.slane %v82_v9, 4 }
  0xb0   :  { %v84_v11 = vadd.f32 %v83_v10, %v82_v9 }
  0xb2   :  { %v85_v12 = vrot.slane %v84_v11, 2 }
  0xb4   :  { %v86_v13 = vadd.f32 %v85_v12, %v84_v11 }
  0xb6   :  { %v87_v14 = vrot.slane %v86_v13, 1 }
  0xb8   :  { %v88_v15 = vadd.f32 %v87_v14, %v86_v13 }
  0xba   :  { %111 = vpush %v88_v15 }
  0xeb   :  { %s112_s0 = spop %111 }
  0xec   :  { %91 = sst [smem:[#allocation8]] %s112_s0 }
  0xed   :  { %99 = dma.smem_to_hbm %s176_s1, 16, %s203_s2, [#allocation5]  }
  0xee   :  { %170 = dma.done.wait [#allocation5], 16  }
  0xef   :  { %171 = vsyncadd [#allocation5], 4294967280 }
  0xf0   :  { %103 = sfence }
  0xf1   :  { %104 = vsyncpa [#allocation4], 1 }
  0xf2   :  { %105 = vsyncpa [#allocation7], 1 }
  0xf3   :  { %106 = vsyncpa [#allocation5], 1 }

</bundles_post_ra>
